<compile_context>
chip_gen: v6e
topology: v6e:2x2x1
jax: 0.10.0
libtpu: 0.0.40
codegen_flags: <defaults>
</compile_context>

<pallas_src>
import jax
import jax.numpy as jnp
from jax.experimental import pallas as pl
from jax.experimental.pallas import tpu as pltpu

# Soft target for the per-step assembled-output block (HBM copy efficiency
# saturates around 0.5-2 MiB tiles; larger tiles only add VMEM pressure).
_TARGET_BLOCK_BYTES = 2 << 20

# Scoped-VMEM limit handed to Mosaic; <= 32 MiB is safe on every generation
# (v7x has 64 MiB/TC) and is far above what ~2 MiB double-buffered blocks need.
_DEFAULT_VMEM_LIMIT = 32 << 20


def _num_tensorcores_per_chip():
    """Best-effort: 2 on megacore chips (v4/v7x style), 1 on v5e/v6e."""
    try:
        kind = jax.devices()[0].device_kind.lower()
    except Exception:  # pragma: no cover - defensive
        return 1
    if any(tag in kind for tag in ("v4", "v7", "7x")):
        return 2
    return 1


def _vmem_limit_bytes(block_bytes):
    """Scoped VMEM limit: covers double-buffered in+out blocks, capped at a
    fraction of physical VMEM when the chip can be queried."""
    needed = 4 * block_bytes + (8 << 20)
    limit = max(_DEFAULT_VMEM_LIMIT, needed)
    try:
        cap = getattr(pltpu.get_tpu_info(), "vmem_capacity_bytes", None)
        if cap:
            limit = min(limit, max((cap * 3) // 4, needed))
    except Exception:  # pragma: no cover - defensive
        pass
    return int(limit)


def _pick_class_block(n_classes, class_bytes, n_cores):
    """Classes per grid step.

    class_bytes = bytes of one assembled output row (L*D*itemsize).  The class
    axis is the leading block dim, so ANY value is layout-legal; we prefer an
    exact divisor of N near the target so the last block is not ragged, and
    fall back to a cdiv grid (masked leading-dim tail) otherwise.
    """
    if n_classes <= 0:
        return 1
    b = max(1, _TARGET_BLOCK_BYTES // max(1, class_bytes))
    if n_cores > 1:
        # Keep >= 4 grid steps so each TensorCore of a megacore chip still gets
        # >= 2 steps and overlaps input prefetch with output write-back.
        b = min(b, max(1, n_classes // 4))
    b = min(b, n_classes)
    if b >= n_classes:
        return n_classes
    for cand in range(b, max(1, b // 2) - 1, -1):
        if n_classes % cand == 0:
            return cand
    return b  # ragged tail; OOB rows of the final leading-dim block are masked


def _make_assemble_kernel(prompt_len, suffix_len):
    """out[:, 0:1] = prefix ; out[:, 1:1+P] = prompt ; out[:, 1+P:] = suffix.

    All blocks keep the full (seq, D) trailing dims, so every store writes full
    lanes; the copy is VMEM-local and hidden under the HBM DMA roofline.
    """
    p, s = int(prompt_len), int(suffix_len)

    def kernel(*refs):
        out_ref = refs[-1]
        srcs = refs[:-1]
        idx = 0
        out_ref[:, 0:1, :] = srcs[idx][...]
        idx += 1
        if p:
            out_ref[:, 1:1 + p, :] = srcs[idx][...]
            idx += 1
        if s:
            out_ref[:, 1 + p:, :] = srcs[idx][...]
            idx += 1

    return kernel


def attriclip_prompt_forward(tokenized_prompts,
                             token_prefix,
                             new_prompt_tokens,
                             token_suffix,
                             old_prompt_tokens=None,
                             *,
                             class_block=None):
    """Pallas implementation of AttriCLIP_Prompt.forward().

    tokenized_prompts: (N, L) int32         -- returned as-is
    token_prefix:      (N, 1, D)
    new_prompt_tokens: (N_new, P, D)
    token_suffix:      (N, L-1-P, D)
    old_prompt_tokens: optional (N_old, P, D); concatenated in front of
                       new_prompt_tokens along the class axis (torch.cat).
    class_block:       optional override of the classes-per-step block size
                       (tuning / testing knob).
    """
    if old_prompt_tokens is not None:
        if old_prompt_tokens.dtype != new_prompt_tokens.dtype:
            raise ValueError("old/new prompt token dtypes must match "
                             "(torch.cat would error on mismatch)")
        prompt_tokens = jnp.concatenate([old_prompt_tokens, new_prompt_tokens],
                                        axis=0)
    else:
        prompt_tokens = new_prompt_tokens

    N, one, D = token_prefix.shape
    if one != 1:
        raise ValueError("token_prefix must be (N, 1, D)")
    P = int(prompt_tokens.shape[1])
    S = int(token_suffix.shape[1])
    L = 1 + P + S
    dtype = token_prefix.dtype

    if prompt_tokens.dtype != dtype or token_suffix.dtype != dtype:
        raise ValueError("token_prefix / prompt_tokens / token_suffix dtypes "
                         "must all match (torch.cat semantics)")
    if prompt_tokens.shape[-1] != D or token_suffix.shape[-1] != D:
        raise ValueError("embed_dim mismatch between prefix / prompt / suffix")
    if (prompt_tokens.shape[0] != N or token_suffix.shape[0] != N
            or tokenized_prompts.shape[0] != N):
        raise ValueError("class-count mismatch: prefix/suffix/tokenized have "
                         f"N={N}, prompt_tokens has {prompt_tokens.shape[0]} "
                         "(old + new must equal N)")
    if tokenized_prompts.ndim == 2 and tokenized_prompts.shape[1] != L:
        raise ValueError(f"tokenized_prompts length {tokenized_prompts.shape[1]}"
                         f" != 1 + prompt_len + suffix_len = {L}")

    itemsize = jnp.dtype(dtype).itemsize
    class_bytes = L * D * itemsize
    n_cores = _num_tensorcores_per_chip()

    if class_block is not None:
        if class_block < 1:
            raise ValueError("class_block must be >= 1")
        B = min(int(class_block), N)
    else:
        B = _pick_class_block(N, class_bytes, n_cores)

    grid = (pl.cdiv(N, B),)

    # Build the input list, skipping degenerate zero-width segments (P == 0 or
    # S == 0 would otherwise create illegal zero-sized blocks).
    inputs = [token_prefix]
    in_specs = [pl.BlockSpec((B, 1, D), lambda i: (i, 0, 0))]
    if P:
        inputs.append(prompt_tokens)
        in_specs.append(pl.BlockSpec((B, P, D), lambda i: (i, 0, 0)))
    if S:
        inputs.append(token_suffix)
        in_specs.append(pl.BlockSpec((B, S, D), lambda i: (i, 0, 0)))

    prompts = pl.pallas_call(
        _make_assemble_kernel(P, S),
        out_shape=jax.ShapeDtypeStruct((N, L, D), dtype),
        grid=grid,
        in_specs=in_specs,
        out_specs=pl.BlockSpec((B, L, D), lambda i: (i, 0, 0)),
        compiler_params=pltpu.CompilerParams(
            dimension_semantics=("parallel",),
            vmem_limit_bytes=_vmem_limit_bytes(B * class_bytes)),
    )(*inputs)

    return tokenized_prompts, prompts


if __name__ == "__main__":
    key, key3 = jax.random.split(jax.random.PRNGKey(0))

    def make_case(k, n, p, l, d, dtype=jnp.float32):
        k_tok, k_emb, k_prompt = jax.random.split(k, 3)
        tokenized = jax.random.randint(k_tok, (n, l), 0, 1000, dtype=jnp.int32)
        # TODO(synk): real module runs clip_model.token_embedding (a lookup
        # table) inside update_new_classes; substitute a deterministic random
        # embedding of the same shape here.
        emb = (jax.random.normal(k_emb, (n, l, d)) * 0.02).astype(dtype)
        prefix = emb[:, :1, :]                # (N, 1, D)     SOS embedding
        suffix = emb[:, 1 + p:, :]            # (N, L-1-P, D) class name + EOS
        prompt = (jax.random.normal(k_prompt, (n, p, d)) * 0.02).astype(dtype)
        return tokenized, prefix, prompt, suffix

    # Case 1: fresh task (old_prompt_tokens is None), tiny shapes (D < 128).
    tok, prefix, prompt, suffix = make_case(key, n=4, p=4, l=16, d=32)
    tok_out, prompts = attriclip_prompt_forward(tok, prefix, prompt, suffix)
    jax.block_until_ready(prompts)
    jax.block_until_ready(tok_out)
    ref = jnp.concatenate([prefix, prompt, suffix], axis=1)
    assert prompts.shape == (4, 16, 32)
    assert jnp.array_equal(prompts, ref)
    assert jnp.array_equal(tok_out, tok)

    # Case 2: continual-learning path (old + new prompt tokens, old first).
    tok_out2, prompts2 = attriclip_prompt_forward(
        tok, prefix, prompt[2:], suffix, old_prompt_tokens=prompt[:2])
    jax.block_until_ready(prompts2)
    assert jnp.array_equal(prompts2, ref)
    assert jnp.array_equal(tok_out2, tok)

    # Case 3: lane-dense (D % 128 == 0) multi-block grid path.
    tok3, prefix3, prompt3, suffix3 = make_case(key3, n=16, p=4, l=16, d=128)
    tok_out3, prompts3 = attriclip_prompt_forward(
        tok3, prefix3, prompt3, suffix3, class_block=8)
    jax.block_until_ready(prompts3)
    ref3 = jnp.concatenate([prefix3, prompt3, suffix3], axis=1)
    assert prompts3.shape == (16, 16, 128)
    assert jnp.array_equal(prompts3, ref3)
    assert jnp.array_equal(tok_out3, tok3)

    print("KERNEL_OK")
</pallas_src>

<mosaic_0001>
module attributes {stable_mosaic.version = 11 : i64} {
  func.func @kernel(%arg0: i32, %arg1: memref<4x1x32xf32, #tpu.memory_space<vmem>>, %arg2: memref<4x4x32xf32, #tpu.memory_space<vmem>>, %arg3: memref<4x11x32xf32, #tpu.memory_space<vmem>>, %arg4: memref<4x16x32xf32, #tpu.memory_space<vmem>>) attributes {dimension_semantics = [#tpu.dimension_semantics<parallel>], iteration_bounds = array<i64: 1>, scalar_prefetch = 0 : i64, scratch_operands = 0 : i64, tpu.core_type = #tpu.core_type<tc>, window_params = [{transform_indices = @transform_0, window_bounds = array<i64: 4, 1, 32>}, {transform_indices = @transform_1, window_bounds = array<i64: 4, 4, 32>}, {transform_indices = @transform_2, window_bounds = array<i64: 4, 11, 32>}, {transform_indices = @transform_3, window_bounds = array<i64: 4, 16, 32>}]} {
    %c0 = arith.constant 0 : index
    %c0_0 = arith.constant 0 : index
    %c0_1 = arith.constant 0 : index
    %0 = vector.load %arg1[%c0, %c0_0, %c0_1] : memref<4x1x32xf32, #tpu.memory_space<vmem>>, vector<4x1x32xf32>
    %c0_2 = arith.constant 0 : index
    %c0_3 = arith.constant 0 : index
    %c0_4 = arith.constant 0 : index
    %1 = vector.load %arg4[%c0_2, %c0_3, %c0_4] : memref<4x16x32xf32, #tpu.memory_space<vmem>>, vector<4x1x32xf32>
    tpu.vector_store %arg4[%c0_2, %c0_3, %c0_4], %0 {strides = array<i32>} : memref<4x16x32xf32, #tpu.memory_space<vmem>>, vector<4x1x32xf32>,
    %c0_5 = arith.constant 0 : index
    %c0_6 = arith.constant 0 : index
    %c0_7 = arith.constant 0 : index
    %2 = vector.load %arg2[%c0_5, %c0_6, %c0_7] : memref<4x4x32xf32, #tpu.memory_space<vmem>>, vector<4x4x32xf32>
    %c0_8 = arith.constant 0 : index
    %c1 = arith.constant 1 : index
    %c0_9 = arith.constant 0 : index
    %3 = vector.load %arg4[%c0_8, %c1, %c0_9] : memref<4x16x32xf32, #tpu.memory_space<vmem>>, vector<4x4x32xf32>
    tpu.vector_store %arg4[%c0_8, %c1, %c0_9], %2 {strides = array<i32>} : memref<4x16x32xf32, #tpu.memory_space<vmem>>, vector<4x4x32xf32>,
    %c0_10 = arith.constant 0 : index
    %c0_11 = arith.constant 0 : index
    %c0_12 = arith.constant 0 : index
    %4 = vector.load %arg3[%c0_10, %c0_11, %c0_12] : memref<4x11x32xf32, #tpu.memory_space<vmem>>, vector<4x11x32xf32>
    %c0_13 = arith.constant 0 : index
    %c5 = arith.constant 5 : index
    %c0_14 = arith.constant 0 : index
    %5 = vector.load %arg4[%c0_13, %c5, %c0_14] : memref<4x16x32xf32, #tpu.memory_space<vmem>>, vector<4x11x32xf32>
    tpu.vector_store %arg4[%c0_13, %c5, %c0_14], %4 {strides = array<i32>} : memref<4x16x32xf32, #tpu.memory_space<vmem>>, vector<4x11x32xf32>,
    return
  }
  func.func @transform_0(%arg0: i32) -> (i32, i32, i32) {
    %c0_i32 = arith.constant 0 : i32
    %c0_i32_0 = arith.constant 0 : i32
    %c0_i32_1 = arith.constant 0 : i32
    return %arg0, %c0_i32, %c0_i32_0 : i32, i32, i32
  }
  func.func @transform_1(%arg0: i32) -> (i32, i32, i32) {
    %c0_i32 = arith.constant 0 : i32
    %c0_i32_0 = arith.constant 0 : i32
    %c0_i32_1 = arith.constant 0 : i32
    return %arg0, %c0_i32, %c0_i32_0 : i32, i32, i32
  }
  func.func @transform_2(%arg0: i32) -> (i32, i32, i32) {
    %c0_i32 = arith.constant 0 : i32
    %c0_i32_0 = arith.constant 0 : i32
    %c0_i32_1 = arith.constant 0 : i32
    return %arg0, %c0_i32, %c0_i32_0 : i32, i32, i32
  }
  func.func @transform_3(%arg0: i32) -> (i32, i32, i32) {
    %c0_i32 = arith.constant 0 : i32
    %c0_i32_0 = arith.constant 0 : i32
    %c0_i32_1 = arith.constant 0 : i32
    return %arg0, %c0_i32, %c0_i32_0 : i32, i32, i32
  }
}

</mosaic_0001>

<bundles_post_ra>
// kernel: tpu_custom_call.1
= control target key start
LH: loop header
LB: loop body
LE: loop exit
PB: predicated region body
PF: predicated region fallthrough
CT: control target
= control target key end

     0   :  { %vm19_vm0 = vcmask 253952   ;;  %vm28_vm1 = vcmask 257024   ;;  %vm41_vm2 = vcmask 261120   ;;  %vm43_vm3 = vcmask 256000   ;;  %s174_s0 = inlined_call_operand.vmem [shape: f32[4,1,32], index: 0, kind: input, shape index: {}]   ;;  %s175_s1 = inlined_call_operand.vmem [shape: f32[4,4,32], index: 1, kind: input, shape index: {}]   ;;  %s176_s2 = inlined_call_operand.vmem [shape: f32[4,11,32], index: 2, kind: input, shape index: {}]   ;;  %s177_s3 = inlined_call_operand.hbm [shape: f32[4,16,32], index: 3, kind: output, shape index: {}]  }
   0x1   :  { %v15_v0 = vld [vmem:[%s174_s0] sm:$0x1]  ;;  %v16_v1 = vld [vmem:[%s174_s0 + $0x1] sm:$0x1]  ;;  %v17_v2 = vld [vmem:[%s174_s0 + $0x2] sm:$0x1] }
   0x2   :  { %20 = vst.msk [vmem:[#allocation2] sm:$0x1] %vm19_vm0, %v15_v0  ;;  %21 = vst.msk [vmem:[#allocation2 + $0x10] sm:$0x1] %vm19_vm0, %v16_v1  ;;  %v18_v3 = vld [vmem:[%s174_s0 + $0x3] sm:$0x1] }
   0x3   :  { %v24_v4 = vld [vmem:[%s175_s1] sm:$0xf]  ;;  %22 = vst.msk [vmem:[#allocation2 + $0x20] sm:$0x1] %vm19_vm0, %v17_v2  ;;  %23 = vst.msk [vmem:[#allocation2 + $0x30] sm:$0x1] %vm19_vm0, %v18_v3 }
   0x4   :  { %29 = vst.msk [vmem:[#allocation2 + $0x1] sm:$0xf] %vm28_vm1, %v24_v4  ;;  %v25_v5 = vld [vmem:[%s175_s1 + $0x4] sm:$0xf]  ;;  %v26_v6 = vld [vmem:[%s175_s1 + $0x8] sm:$0xf] }
   0x5   :  { %v27_v7 = vld [vmem:[%s175_s1 + $0xc] sm:$0xf]  ;;  %30 = vst.msk [vmem:[#allocation2 + $0x11] sm:$0xf] %vm28_vm1, %v25_v5  ;;  %31 = vst.msk [vmem:[#allocation2 + $0x21] sm:$0xf] %vm28_vm1, %v26_v6 }
   0x6   :  { %32 = vst.msk [vmem:[#allocation2 + $0x31] sm:$0xf] %vm28_vm1, %v27_v7  ;;  %v33_v8 = vld [vmem:[%s176_s2] sm:$0xff]  ;;  %v34_v9 = vld [vmem:[%s176_s2 + $0x8] sm:$0x7]  ;;  %v35_v10 = vld [vmem:[%s176_s2 + $0x10] sm:$0xff] }
   0x7   :  { %42 = vst.msk [vmem:[#allocation2 + $0x5] sm:$0xff] %vm41_vm2, %v33_v8  ;;  %45 = vst.msk [vmem:[#allocation2 + $0x15] sm:$0xff] %vm41_vm2, %v35_v10  ;;  %v36_v11 = vld [vmem:[%s176_s2 + $0x18] sm:$0x7]  ;;  %v37_v12 = vld [vmem:[%s176_s2 + $0x20] sm:$0xff] }
   0x8   :  { %44 = vst.msk [vmem:[#allocation2 + $0xd] sm:$0x7] %vm43_vm3, %v34_v9  ;;  %v38_v13 = vld [vmem:[%s176_s2 + $0x28] sm:$0x7]  ;;  %46 = vst.msk [vmem:[#allocation2 + $0x1d] sm:$0x7] %vm43_vm3, %v36_v11 }
   0x9   :  { %47 = vst.msk [vmem:[#allocation2 + $0x25] sm:$0xff] %vm41_vm2, %v37_v12  ;;  %v39_v14 = vld [vmem:[%s176_s2 + $0x30] sm:$0xff]  ;;  %v40_v15 = vld [vmem:[%s176_s2 + $0x38] sm:$0x7] }
   0xa   :  { %48 = vst.msk [vmem:[#allocation2 + $0x2d] sm:$0x7] %vm43_vm3, %v38_v13 }
   0xb   :  { %8 = vsyncpa [#allocation3], 0  ;;  %s92_s15 = smov [#allocation2]   ;;  %49 = vst.msk [vmem:[#allocation2 + $0x35] sm:$0xff] %vm41_vm2, %v39_v14 }
   0xc   :  { %s56_s16 = sshll.u32 %s92_s15, 4  ;;  %50 = vst.msk [vmem:[#allocation2 + $0x3d] sm:$0x7] %vm43_vm3, %v40_v15  ;;  %s57_s16 = int_to_ptr.vmem [resolvable:$true] %s56_s16 }
   0xd   :  { %s70_s17 = scalar_lea.vmem %s57_s16, 1024  ;;  %p75_p1 = scmp.lt.s32.totalorder %s57_s16, %s57_s16 }
   0xe   :  { %p71_p0 = scmp.ne.s32.totalorder %s57_s16, %s70_s17  ;;  %p76_p2 = scmp.lt.s32.totalorder %s70_s17, %s70_s17 }
  0x10   :  { %p77_p3 = por %p76_p2, %p75_p1 }
  0x12   :  { %p78_p4 = pnand %p77_p3, %p71_p0 }
  0x14   :  { %81 = shalt.err (!%p78_p4)
}
  0x15   :  { %s93_s18 = smov 128   ;;  %s94_s19 = smov 8  }
  0x16   :  { %62 = dma.vmem_to_hbm [thread:$0]  %s57_s16, 1024, %s177_s3, [#allocation3], %s93_s18, %s93_s18, %s94_s19  }
  0x17   :  { %90 = dma.done.wait [#allocation3], 1024  }
  0x18   :  { %91 = vsyncadd [#allocation3], 4294966272 }
  0x19   :  { %66 = vsyncpa [#allocation3], 1 }

</bundles_post_ra>
